<compile_context>
chip_gen: v7x
topology: tpu7x:2x2x1
jax: 0.10.0
libtpu: 0.0.40
codegen_flags: <defaults>
</compile_context>

<pallas_src>
import jax
import jax.numpy as jnp
from jax.experimental import pallas as pl
from jax.experimental.pallas import tpu as pltpu


def _quintic_squash_kernel(x_ref, a_ref, b_ref, c1_ref, c3_ref, c5_ref, o_ref):
    x = x_ref[...]          # (TW, TN)
    a = a_ref[...]          # (TW, 1) = slope / scale   (broadcast over lanes)
    b = b_ref[...]          # (TW, 1) = bias  / scale
    c1 = c1_ref[...]        # (TW, 1) =  1.875 * scale
    c3 = c3_ref[...]        # (TW, 1) = -1.25  * scale
    c5 = c5_ref[...]        # (TW, 1) =  0.375 * scale

    u = jnp.clip(x * a - b, -1.0, 1.0)
    u2 = u * u
    # scale * (1.875*u - 1.25*u^3 + 0.375*u^5), Horner on u^2 with the scale
    # pre-folded into the coefficients.
    o_ref[...] = u * (c1 + u2 * (c3 + c5 * u2))


def _round_up(x, m):
    return ((x + m - 1) // m) * m


def quintic_squash(x, slope, bias, scale, *, tile_w=512, tile_n=2048):
    """x: (W, N); slope/bias/scale: (W,)  ->  (W, N)."""
    W, N = x.shape
    dtype = x.dtype
    itemsize = jnp.dtype(dtype).itemsize

    # Fold all per-row work once in the wrapper: O(W) ops instead of per-element.
    # (Requires scale > 0 for the divide-before-clip to match the reference.)
    a = (slope / scale).astype(dtype).reshape(W, 1)
    b = (bias / scale).astype(dtype).reshape(W, 1)
    c1 = (1.875 * scale).astype(dtype).reshape(W, 1)
    c3 = (-1.25 * scale).astype(dtype).reshape(W, 1)
    c5 = (0.375 * scale).astype(dtype).reshape(W, 1)

    # Sublane tile rounded to the dtype packing granule; lane tile to 128.
    sub = max(8, 32 // itemsize)      # f32: 8, bf16: 16, int8/fp8: 32
    tw = min(_round_up(tile_w, sub), _round_up(W, sub))
    tn = min(_round_up(tile_n, 128), _round_up(N, 128))

    gw = pl.cdiv(W, tw)
    gn = pl.cdiv(N, tn)

    # Double-buffered input + output X tiles dominate VMEM; params are tiny.
    tile_bytes = tw * tn * itemsize
    need = 4 * tile_bytes + 10 * tw * itemsize + (2 << 20)   # + margin
    vmem_limit = min(56 * 1024 * 1024, max(16 * 1024 * 1024, int(need)))

    return pl.pallas_call(
        _quintic_squash_kernel,
        out_shape=jax.ShapeDtypeStruct((W, N), dtype),
        grid_spec=pl.GridSpec(
            grid=(gw, gn),                                   # N innermost:
            in_specs=[                                       # param blocks keep
                pl.BlockSpec((tw, tn), lambda i, j: (i, j)),  # the same index ->
                pl.BlockSpec((tw, 1), lambda i, j: (i, 0)),   # their DMAs are
                pl.BlockSpec((tw, 1), lambda i, j: (i, 0)),   # skipped in the
                pl.BlockSpec((tw, 1), lambda i, j: (i, 0)),   # inner loop.
                pl.BlockSpec((tw, 1), lambda i, j: (i, 0)),
                pl.BlockSpec((tw, 1), lambda i, j: (i, 0)),
            ],
            out_specs=pl.BlockSpec((tw, tn), lambda i, j: (i, j)),
        ),
        compiler_params=pltpu.CompilerParams(
            dimension_semantics=("parallel", "parallel"),
            vmem_limit_bytes=vmem_limit,
        ),
    )(x, a, b, c1, c3, c5)


def init_params(key, width, dtype=jnp.float32):
    """Re-creation of the PyTorch __init__:
       bias  ~ U(-eps, eps)
       slope ~ U(-eps, eps) + 1
       scale ~ U(-eps, eps) + 1
       with eps = 1/width."""
    eps = 1.0 / width
    kb, ksl, ksc = jax.random.split(key, 3)
    bias = jax.random.uniform(kb, (width,), dtype=dtype) * 2 * eps - eps
    slope = jax.random.uniform(ksl, (width,), dtype=dtype) * 2 * eps - eps + 1.0
    scale = jax.random.uniform(ksc, (width,), dtype=dtype) * 2 * eps - eps + 1.0
    return bias, slope, scale


def reference(x, slope, bias, scale):
    s = slope[:, None]
    b = bias[:, None]
    c = scale[:, None]
    u = jnp.clip((x * s - b) / c, -1.0, 1.0)
    return c * (1.875 * u - 1.25 * u ** 3 + 0.375 * u ** 5)


# TODO(synk): penalty() is a training-time L2 regularizer on the parameters,
# not part of the forward pass; it is intentionally not implemented as a kernel.

if __name__ == "__main__":
    # Small demo shapes; W and N deliberately NOT multiples of 8/128 to
    # exercise the masked (un-padded) ragged-edge path.
    width, n = 20, 200
    key = jax.random.PRNGKey(0)
    kx, kp = jax.random.split(key)

    x = jax.random.normal(kx, (width, n), dtype=jnp.float32)
    bias, slope, scale = init_params(kp, width)

    out = quintic_squash(x, slope, bias, scale)
    out = jax.block_until_ready(out)

    ref = reference(x, slope, bias, scale)
    assert out.shape == ref.shape and out.dtype == ref.dtype
    # Param folding (slope/scale, bias/scale, 1.875*scale, ...) changes
    # rounding by a few ULPs vs. the literal reference, hence 1e-5 tol.
    assert jnp.allclose(out, ref, atol=1e-5, rtol=1e-5), "mismatch vs reference"

    print("KERNEL_OK")
</pallas_src>

<mosaic_0001>
module attributes {stable_mosaic.version = 11 : i64} {
  func.func @_quintic_squash_kernel(%arg0: i32, %arg1: i32, %arg2: memref<24x256xf32, #tpu.memory_space<vmem>>, %arg3: memref<24x1xf32, #tpu.memory_space<vmem>>, %arg4: memref<24x1xf32, #tpu.memory_space<vmem>>, %arg5: memref<24x1xf32, #tpu.memory_space<vmem>>, %arg6: memref<24x1xf32, #tpu.memory_space<vmem>>, %arg7: memref<24x1xf32, #tpu.memory_space<vmem>>, %arg8: memref<24x256xf32, #tpu.memory_space<vmem>>) attributes {dimension_semantics = [#tpu.dimension_semantics<parallel>, #tpu.dimension_semantics<parallel>], iteration_bounds = array<i64: 1, 1>, scalar_prefetch = 0 : i64, scratch_operands = 0 : i64, tpu.core_type = #tpu.core_type<tc>, window_params = [{transform_indices = @transform_0, window_bounds = array<i64: 24, 256>}, {transform_indices = @transform_1, window_bounds = array<i64: 24, 1>}, {transform_indices = @transform_2, window_bounds = array<i64: 24, 1>}, {transform_indices = @transform_3, window_bounds = array<i64: 24, 1>}, {transform_indices = @transform_4, window_bounds = array<i64: 24, 1>}, {transform_indices = @transform_5, window_bounds = array<i64: 24, 1>}, {transform_indices = @transform_6, window_bounds = array<i64: 24, 256>}]} {
    %c0 = arith.constant 0 : index
    %c0_0 = arith.constant 0 : index
    %0 = vector.load %arg2[%c0, %c0_0] : memref<24x256xf32, #tpu.memory_space<vmem>>, vector<24x256xf32>
    %c0_1 = arith.constant 0 : index
    %c0_2 = arith.constant 0 : index
    %1 = vector.load %arg3[%c0_1, %c0_2] : memref<24x1xf32, #tpu.memory_space<vmem>>, vector<24x1xf32>
    %c0_3 = arith.constant 0 : index
    %c0_4 = arith.constant 0 : index
    %2 = vector.load %arg4[%c0_3, %c0_4] : memref<24x1xf32, #tpu.memory_space<vmem>>, vector<24x1xf32>
    %c0_5 = arith.constant 0 : index
    %c0_6 = arith.constant 0 : index
    %3 = vector.load %arg5[%c0_5, %c0_6] : memref<24x1xf32, #tpu.memory_space<vmem>>, vector<24x1xf32>
    %c0_7 = arith.constant 0 : index
    %c0_8 = arith.constant 0 : index
    %4 = vector.load %arg6[%c0_7, %c0_8] : memref<24x1xf32, #tpu.memory_space<vmem>>, vector<24x1xf32>
    %c0_9 = arith.constant 0 : index
    %c0_10 = arith.constant 0 : index
    %5 = vector.load %arg7[%c0_9, %c0_10] : memref<24x1xf32, #tpu.memory_space<vmem>>, vector<24x1xf32>
    %6 = vector.broadcast %1 : vector<24x1xf32> to vector<24x256xf32>
    %7 = arith.mulf %0, %6 : vector<24x256xf32>
    %8 = vector.broadcast %2 : vector<24x1xf32> to vector<24x256xf32>
    %9 = arith.subf %7, %8 : vector<24x256xf32>
    %cst = arith.constant -1.000000e+00 : f32
    %cst_11 = arith.constant 1.000000e+00 : f32
    %10 = vector.broadcast %cst : f32 to vector<24x256xf32>
    %11 = arith.maximumf %10, %9 : vector<24x256xf32>
    %12 = vector.broadcast %cst_11 : f32 to vector<24x256xf32>
    %13 = arith.minimumf %12, %11 : vector<24x256xf32>
    %14 = arith.mulf %13, %13 : vector<24x256xf32>
    %15 = vector.broadcast %5 : vector<24x1xf32> to vector<24x256xf32>
    %16 = arith.mulf %15, %14 : vector<24x256xf32>
    %17 = vector.broadcast %4 : vector<24x1xf32> to vector<24x256xf32>
    %18 = arith.addf %17, %16 : vector<24x256xf32>
    %19 = arith.mulf %14, %18 : vector<24x256xf32>
    %20 = vector.broadcast %3 : vector<24x1xf32> to vector<24x256xf32>
    %21 = arith.addf %20, %19 : vector<24x256xf32>
    %22 = arith.mulf %13, %21 : vector<24x256xf32>
    %c0_12 = arith.constant 0 : index
    %c0_13 = arith.constant 0 : index
    %23 = vector.load %arg8[%c0_12, %c0_13] : memref<24x256xf32, #tpu.memory_space<vmem>>, vector<24x256xf32>
    tpu.vector_store %arg8[%c0_12, %c0_13], %22 {strides = array<i32>} : memref<24x256xf32, #tpu.memory_space<vmem>>, vector<24x256xf32>,
    return
  }
  func.func @transform_0(%arg0: i32, %arg1: i32) -> (i32, i32) {
    %c0_i32 = arith.constant 0 : i32
    return %arg0, %arg1 : i32, i32
  }
  func.func @transform_1(%arg0: i32, %arg1: i32) -> (i32, i32) {
    %c0_i32 = arith.constant 0 : i32
    %c0_i32_0 = arith.constant 0 : i32
    return %arg0, %c0_i32 : i32, i32
  }
  func.func @transform_2(%arg0: i32, %arg1: i32) -> (i32, i32) {
    %c0_i32 = arith.constant 0 : i32
    %c0_i32_0 = arith.constant 0 : i32
    return %arg0, %c0_i32 : i32, i32
  }
  func.func @transform_3(%arg0: i32, %arg1: i32) -> (i32, i32) {
    %c0_i32 = arith.constant 0 : i32
    %c0_i32_0 = arith.constant 0 : i32
    return %arg0, %c0_i32 : i32, i32
  }
  func.func @transform_4(%arg0: i32, %arg1: i32) -> (i32, i32) {
    %c0_i32 = arith.constant 0 : i32
    %c0_i32_0 = arith.constant 0 : i32
    return %arg0, %c0_i32 : i32, i32
  }
  func.func @transform_5(%arg0: i32, %arg1: i32) -> (i32, i32) {
    %c0_i32 = arith.constant 0 : i32
    %c0_i32_0 = arith.constant 0 : i32
    return %arg0, %c0_i32 : i32, i32
  }
  func.func @transform_6(%arg0: i32, %arg1: i32) -> (i32, i32) {
    %c0_i32 = arith.constant 0 : i32
    return %arg0, %arg1 : i32, i32
  }
}

</mosaic_0001>

<bundles_post_ra>
// kernel: tpu_custom_call.1
= control target key start
LH: loop header
LB: loop body
LE: loop exit
PB: predicated region body
PF: predicated region fallthrough
CT: control target
= control target key end

     0   :  { %v238_v2 = vmov 0   ;;  %s352_s0 = inlined_call_operand.vmem [shape: f32[20,200], index: 0, kind: input, shape index: {}]   ;;  %s353_s1 = inlined_call_operand.vmem [shape: f32[20,1], index: 1, kind: input, shape index: {}]   ;;  %s354_s2 = inlined_call_operand.vmem [shape: f32[20,1], index: 2, kind: input, shape index: {}]   ;;  %s355_s3 = inlined_call_operand.vmem [shape: f32[20,1], index: 3, kind: input, shape index: {}]   ;;  %s356_s4 = inlined_call_operand.vmem [shape: f32[20,1], index: 4, kind: input, shape index: {}]   ;;  %s357_s5 = inlined_call_operand.vmem [shape: f32[20,1], index: 5, kind: input, shape index: {}]   ;;  %s358_s6 = inlined_call_operand.hbm [shape: f32[20,200], index: 6, kind: output, shape index: {}]  }
   0x1   :  { %v32_v0 = vld [vmem:[%s353_s1 + $0x10] sm:$0xff]  ;;  %v30_v1 = vld [vmem:[%s353_s1] sm:$0xff]  ;;  %213 = vset.pattern.permute.xlu1 %v238_v2  ;;  %212 = vset.pattern.permute.xlu0 %v238_v2  ;;  %v31_v4 = vld [vmem:[%s353_s1 + $0x8] sm:$0xff] }
   0x2   :  { %57 = vperm.xlu1 %213, %v32_v0   ;;  %47 = vperm.xlu0 %212, %v30_v1   ;;  %v33_v3 = vld [vmem:[%s354_s2] sm:$0xff]  ;;  %v35_v5 = vld [vmem:[%s354_s2 + $0x10] sm:$0xff]  ;;  %v34_v6 = vld [vmem:[%s354_s2 + $0x8] sm:$0xff] }
   0x6   :  { %68 = vperm.xlu1 %213, %v33_v3   ;;  %52 = vperm.xlu0 %212, %v31_v4  }
   0x7   :  { %11 = vsyncpa [#allocation3], 0  ;;  %v43_v7 = vld [vmem:[%s357_s5 + $0x8] sm:$0xff]  ;;  %v42_v8 = vld [vmem:[%s357_s5] sm:$0xff] }
   0x8   :  { %v39_v9 = vld [vmem:[%s356_s4] sm:$0xff]  ;;  %v44_v10 = vld [vmem:[%s357_s5 + $0x10] sm:$0xff]  ;;  %v40_v12 = vld [vmem:[%s356_s4 + $0x8] sm:$0xff] }
   0x9   :  { %v41_v11 = vld [vmem:[%s356_s4 + $0x10] sm:$0xff]  ;;  %v37_v13 = vld [vmem:[%s355_s3 + $0x8] sm:$0xff]  ;;  %v36_v14 = vld [vmem:[%s355_s3] sm:$0xff] }
   0xa   :  { %78 = vperm.xlu1 %213, %v35_v5   ;;  %73 = vperm.xlu0 %212, %v34_v6   ;;  %v38_v15 = vld [vmem:[%s355_s3 + $0x10] sm:$0xff]  ;;  %v24_v18 = vld [vmem:[%s352_s0] sm:$0xff]  ;;  %v25_v19 = vld [vmem:[%s352_s0 + $0x8] sm:$0xff] }
   0xb   :  { %v26_v22 = vld [vmem:[%s352_s0 + $0x10] sm:$0xff]  ;;  %v27_v23 = vld [vmem:[%s352_s0 + $0x18] sm:$0xff]  ;;  %v28_v24 = vld [vmem:[%s352_s0 + $0x20] sm:$0xff] }
   0xc   :  { %v29_v25 = vld [vmem:[%s352_s0 + $0x28] sm:$0xff]  ;;  %s239_s0 = smov [#allocation2]  }
   0xd   :  { %s191_s10 = sshll.u32 %s239_s0, 4  ;;  %s192_s10 = int_to_ptr.vmem [resolvable:$true] %s191_s10 }
   0xe   :  { %112 = vperm.xlu1 %213, %v43_v7   ;;  %107 = vperm.xlu0 %212, %v42_v8   ;;  %s214_s11 = scalar_lea.vmem %s192_s10, 768  ;;  %p219_p1 = scmp.lt.s32.totalorder %s192_s10, %s192_s10 }
   0xf   :  { %p215_p0 = scmp.ne.s32.totalorder %s192_s10, %s214_s11  ;;  %p220_p2 = scmp.lt.s32.totalorder %s214_s11, %s214_s11 }
  0x11   :  { %p221_p3 = por %p220_p2, %p219_p1 }
  0x12   :  { %128 = vperm.xlu1 %213, %v39_v9   ;;  %117 = vperm.xlu0 %212, %v44_v10  }
  0x13   :  { %p222_p4 = pnand %p221_p3, %p215_p0 }
  0x16   :  { %138 = vperm.xlu1 %213, %v41_v11   ;;  %133 = vperm.xlu0 %212, %v40_v12  }
  0x1a   :  { %160 = vperm.xlu1 %213, %v37_v13   ;;  %155 = vperm.xlu0 %212, %v36_v14  }
  0x1e   :  { %165 = vperm.xlu0 %212, %v38_v15  }
  0x81   :  { %v58_v16 = vpop.permute.xlu1 %57  ;;  %v48_v17 = vpop.permute.xlu0 %47 }
  0x82   :  { %v60_v26 = vmul.f32 %v48_v17, %v24_v18  ;;  %v61_v27 = vmul.f32 %v48_v17, %v25_v19  ;;  %v64_v32 = vmul.f32 %v58_v16, %v28_v24  ;;  %v65_v33 = vmul.f32 %v58_v16, %v29_v25 }
  0x85   :  { %v69_v20 = vpop.permute.xlu1 %68  ;;  %v53_v21 = vpop.permute.xlu0 %52 }
  0x86   :  { %v81_v28 = vsub.f32 %v60_v26, %v69_v20  ;;  %v82_v29 = vsub.f32 %v61_v27, %v69_v20  ;;  %v62_v30 = vmul.f32 %v53_v21, %v26_v22  ;;  %v63_v31 = vmul.f32 %v53_v21, %v27_v23 }
  0x88   :  { %v202_v40 = vclamps-f32 %v81_v28, 1.0  ;;  %v203_v41 = vclamps-f32 %v82_v29, 1.0 }
  0x89   :  { %v79_v34 = vpop.permute.xlu1 %78  ;;  %v74_v35 = vpop.permute.xlu0 %73 }
  0x8a   :  { %v83_v36 = vsub.f32 %v62_v30, %v74_v35  ;;  %v84_v37 = vsub.f32 %v63_v31, %v74_v35  ;;  %v85_v38 = vsub.f32 %v64_v32, %v79_v34  ;;  %v86_v39 = vsub.f32 %v65_v33, %v79_v34 }
  0x8b   :  { %v99_v50 = vmul.f32 %v202_v40, %v202_v40  ;;  %v100_v51 = vmul.f32 %v203_v41, %v203_v41 }
  0x8c   :  { %v204_v42 = vclamps-f32 %v83_v36, 1.0  ;;  %v205_v43 = vclamps-f32 %v84_v37, 1.0  ;;  %v206_v46 = vclamps-f32 %v85_v38, 1.0  ;;  %v207_v47 = vclamps-f32 %v86_v39, 1.0 }
  0x8d   :  { %v113_v44 = vpop.permute.xlu1 %112  ;;  %v108_v45 = vpop.permute.xlu0 %107 }
  0x8e   :  { %v101_v48 = vmul.f32 %v204_v42, %v204_v42  ;;  %v102_v49 = vmul.f32 %v205_v43, %v205_v43  ;;  %v120_v54 = vmul.f32 %v108_v45, %v99_v50  ;;  %v121_v55 = vmul.f32 %v108_v45, %v100_v51 }
  0x8f   :  { %v103_v56 = vmul.f32 %v206_v46, %v206_v46  ;;  %v104_v57 = vmul.f32 %v207_v47, %v207_v47 }
  0x90   :  { %v122_v58 = vmul.f32 %v113_v44, %v101_v48  ;;  %v123_v59 = vmul.f32 %v113_v44, %v102_v49 }
  0x91   :  { %v129_v52 = vpop.permute.xlu1 %128  ;;  %v118_v53 = vpop.permute.xlu0 %117 }
  0x92   :  { %v141_v60 = vadd.f32 %v129_v52, %v120_v54  ;;  %v142_v61 = vadd.f32 %v129_v52, %v121_v55  ;;  %v124_v62 = vmul.f32 %v118_v53, %v103_v56  ;;  %v125_v63 = vmul.f32 %v118_v53, %v104_v57 }
  0x94   :  { %v147_v8 = vmul.f32 %v141_v60, %v99_v50  ;;  %v148_v9 = vmul.f32 %v142_v61, %v100_v51 }
  0x95   :  { %v139_v0 = vpop.permute.xlu1 %138  ;;  %v134_v1 = vpop.permute.xlu0 %133 }
  0x96   :  { %v143_v2 = vadd.f32 %v134_v1, %v122_v58  ;;  %v144_v3 = vadd.f32 %v134_v1, %v123_v59  ;;  %v145_v4 = vadd.f32 %v139_v0, %v124_v62  ;;  %v146_v5 = vadd.f32 %v139_v0, %v125_v63 }
  0x98   :  { %v149_v6 = vmul.f32 %v143_v2, %v101_v48  ;;  %v150_v7 = vmul.f32 %v144_v3, %v102_v49  ;;  %v151_v16 = vmul.f32 %v145_v4, %v103_v56  ;;  %v152_v17 = vmul.f32 %v146_v5, %v104_v57 }
  0x99   :  { %v161_v10 = vpop.permute.xlu1 %160  ;;  %v156_v11 = vpop.permute.xlu0 %155 }
  0x9a   :  { %v170_v12 = vadd.f32 %v161_v10, %v149_v6  ;;  %v171_v13 = vadd.f32 %v161_v10, %v150_v7  ;;  %v168_v14 = vadd.f32 %v156_v11, %v147_v8  ;;  %v169_v15 = vadd.f32 %v156_v11, %v148_v9 }
  0x9c   :  { %v176_v18 = vmul.f32 %v204_v42, %v170_v12  ;;  %v177_v19 = vmul.f32 %v205_v43, %v171_v13  ;;  %v174_v20 = vmul.f32 %v202_v40, %v168_v14  ;;  %v175_v21 = vmul.f32 %v203_v41, %v169_v15 }
  0x9d   :  { %v166_v22 = vpop.permute.xlu0 %165 }
  0x9e   :  { %182 = vst [vmem:[#allocation2 + $0x10] sm:$0xff] %v176_v18  ;;  %183 = vst [vmem:[#allocation2 + $0x18] sm:$0xff] %v177_v19  ;;  %v172_v23 = vadd.f32 %v166_v22, %v151_v16  ;;  %v173_v24 = vadd.f32 %v166_v22, %v152_v17 }
  0x9f   :  { %180 = vst [vmem:[#allocation2] sm:$0xff] %v174_v20  ;;  %181 = vst [vmem:[#allocation2 + $0x8] sm:$0xff] %v175_v21 }
  0xa0   :  { %v178_v25 = vmul.f32 %v206_v46, %v172_v23  ;;  %v179_v26 = vmul.f32 %v207_v47, %v173_v24 }
  0xa2   :  { %184 = vst [vmem:[#allocation2 + $0x20] sm:$0xff] %v178_v25  ;;  %185 = vst [vmem:[#allocation2 + $0x28] sm:$0xff] %v179_v26 }
  0xa3   :  { %225 = shalt.err (!%p222_p4)
}
  0xa4   :  { %s226_s13 = scalar_lea.hbm %s358_s6, 768 }
  0xa5   :  { %p227_p5 = scmp.ne.s32.totalorder %s358_s6, %s226_s13  ;;  %p230_p6 = scmp.lt.u32.totalorder %s226_s13, %s358_s6 }
  0xa7   :  { %p232_p7 = pnand %p230_p6, %p227_p5 }
  0xa9   :  { %235 = shalt.err (!%p232_p7)
}
  0xaa   :  { %s240_s17 = smov 256   ;;  %s241_s18 = smov 16  }
  0xab   :  { %197 = dma.vmem_to_hbm [thread:$0]  %s192_s10, 768, %s358_s6, [#allocation3], %s240_s17, %s240_s17, %s241_s18  }
  0xac   :  { %236 = dma.done.wait [#allocation3], 768  }
  0xad   :  { %237 = vsyncadd [#allocation3], 4294966528 }
  0xae   :  { %201 = vsyncpa [#allocation3], 1 }

</bundles_post_ra>
